<compile_context>
chip_gen: v6e
topology: v6e:2x2x1
jax: 0.10.0
libtpu: 0.0.40
codegen_flags: <defaults>
</compile_context>

<pallas_src>
import math
import jax
import jax.numpy as jnp
from jax.experimental import pallas as pl
from jax.experimental.pallas import tpu as pltpu


def _make_kernel(B: int, Sq: int, D_in: int, Qd: int, offs: dict):
    o_wenc = offs["w_enc"]
    o_benc = offs["b_enc"]
    o_watt = offs["w_att"]
    o_wrx = offs["w_reg_x"]
    o_wrc = offs["w_reg_c"]
    o_breg = offs["b_reg"]

    def kernel(x_ref, q2d_ref, k_ref, v_ref, p_ref, out_ref):
        # ---- static views into the single parameter slab (8-row aligned) ----
        w_enc = p_ref[o_wenc:o_wenc + D_in, :]        # (D_in, lane)
        b_enc = p_ref[o_benc:o_benc + 1, :]           # (1, lane)
        w_att = p_ref[o_watt:o_watt + Qd, :]          # (Qd, lane), 1/sqrt(Kd) folded
        w_reg_x = p_ref[o_wrx:o_wrx + 1, :]           # (1, lane)
        w_reg_c = p_ref[o_wrc:o_wrc + 1, :]           # (1, lane), 1/Sq folded
        b_reg = p_ref[o_breg:o_breg + 1, 0:1]         # (1, 1)

        # ---- encoder MLP branch: relu(x @ W_enc + b_enc) ----
        # Zero-padded columns of w_enc / b_enc stay exactly zero through relu,
        # and w_reg_x is zero there too, so padding never leaks into the output.
        x_enc = jnp.maximum(
            jnp.dot(x_ref[...], w_enc, preferred_element_type=jnp.float32)
            + b_enc, 0.0)                              # (B, lane)

        # ---- single 2-D q-projection for the whole batch (one MXU matmul) ----
        qW = jnp.dot(q2d_ref[...], w_att,
                     preferred_element_type=jnp.float32)   # (B*Sq, lane)

        # ---- per-batch attention, statically unrolled (B is tiny) ----
        outs = []
        for b in range(B):
            qW_b = qW[b * Sq:(b + 1) * Sq, :]          # (Sq, lane) static slice
            k_b = k_ref[b]                             # (Sk, lane)
            # scores = qW_b @ k_b^T without an explicit transpose
            scores = jax.lax.dot_general(
                qW_b, k_b, (((1,), (1,)), ((), ())),
                preferred_element_type=jnp.float32)    # (Sq, Sk)

            # numerically-stable softmax; denominator reciprocal on the EUP
            m = jnp.max(scores, axis=-1, keepdims=True)
            e = jnp.exp(scores - m)
            attn = e * pl.reciprocal(jnp.sum(e, axis=-1, keepdims=True),
                                     approx=True)      # (Sq, Sk)

            v_b = v_ref[b]                             # (Sk, lane)
            context = jnp.dot(attn, v_b,
                              preferred_element_type=jnp.float32)  # (Sq, lane)

            # mean over Sq + regressor contraction fused into one VPU
            # multiply + full reduce (1/Sq already folded into w_reg_c).
            out_c = jnp.sum(context * w_reg_c, keepdims=True)      # (1, 1)
            out_x = jnp.sum(x_enc[b:b + 1, :] * w_reg_x,
                            axis=-1, keepdims=True)                # (1, 1)
            outs.append(out_x + out_c + b_reg)

        # lane-dense (1, B) output row
        out_ref[...] = jnp.concatenate(outs, axis=1).astype(out_ref.dtype)

    return kernel


def prepare_params(params, key_dim: int, n_queries: int):
    """One-time transform of module parameters into a single kernel-ready slab
    (done once outside the hot path, NOT per call)."""
    w_enc = jnp.asarray(params["w_enc"], jnp.float32)
    b_enc = jnp.asarray(params["b_enc"], jnp.float32)
    w_att = jnp.asarray(params["w_att"], jnp.float32)
    w_reg_x = jnp.asarray(params["w_reg_x"], jnp.float32)
    w_reg_c = jnp.asarray(params["w_reg_c"], jnp.float32)
    b_reg = jnp.asarray(params["b_reg"], jnp.float32)

    D_in, H = w_enc.shape
    Qd, Kd = w_att.shape
    Vd = w_reg_c.shape[0]
    lane = max(H, Kd, Vd)

    def pad_cols(a):
        return jnp.pad(a, ((0, 0), (0, lane - a.shape[1])))

    rows, offs = [], {}
    n_rows = 0

    def add(name, a, align=8):
        nonlocal n_rows
        offs[name] = n_rows
        a = pad_cols(a)
        r = a.shape[0]
        pad_r = (-r) % align                 # keep every section 8-row aligned
        if pad_r:
            a = jnp.pad(a, ((0, pad_r), (0, 0)))
        rows.append(a)
        n_rows += a.shape[0]

    add("w_enc", w_enc)                                           # (D_in, H)
    add("b_enc", b_enc.reshape(1, H))                             # (1, H)
    # fold the 1/sqrt(key_dim) attention scale into the weight
    add("w_att", w_att * (1.0 / math.sqrt(float(key_dim))))       # (Qd, Kd)
    add("w_reg_x", w_reg_x.reshape(1, H))                         # (1, H)
    # fold the 1/Sq mean into the context-half of the regressor weight
    add("w_reg_c", w_reg_c.reshape(1, Vd) * (1.0 / float(n_queries)))
    add("b_reg", b_reg.reshape(1, 1))                             # (1, 1)

    slab = jnp.concatenate(rows, axis=0)                          # (n_rows, lane)
    return {"slab": slab, "offsets": offs, "lane": lane,
            "D_in": D_in, "H": H, "Qd": Qd, "Kd": Kd, "Vd": Vd}


def combined_model_forward(x, query, key, value, kparams):
    """Pallas-backed forward pass of CombinedModelWithGeneralAttention."""
    B, D_in = x.shape
    _, Sq, Qd = query.shape
    _, Sk, Kd = key.shape
    Vd = value.shape[-1]
    lane = kparams["lane"]
    slab = kparams["slab"]
    offs = kparams["offsets"]

    # flatten q once in the wrapper (free metadata change; kernel stays 2-D)
    q2d = query.reshape(B * Sq, Qd)

    # lane-pad k / v feature dims up to the slab lane width (no-op here);
    # padded qW / w_reg_c columns are zero so padding never affects the result.
    def pad_last(a):
        pad = lane - a.shape[-1]
        return a if pad == 0 else jnp.pad(a, ((0, 0), (0, 0), (0, pad)))

    k_p = pad_last(key)
    v_p = pad_last(value)

    inputs = (x, q2d, k_p, v_p, slab)

    H = kparams["H"]
    flops = 2 * B * (D_in * lane + Sq * Qd * lane + Sq * Sk * lane
                     + Sq * Sk * lane + (H + Vd))
    bytes_accessed = 4 * (sum(a.size for a in inputs) + B)
    cost = pl.CostEstimate(flops=flops,
                           transcendentals=B * Sq * (Sk + 1),
                           bytes_accessed=bytes_accessed)

    vmem = pl.BlockSpec(memory_space=pltpu.MemorySpace.VMEM)
    out_row = pl.pallas_call(
        _make_kernel(B, Sq, D_in, Qd, offs),
        out_shape=jax.ShapeDtypeStruct((1, B), jnp.float32),   # lane-dense
        in_specs=[vmem] * len(inputs),
        out_specs=vmem,
        cost_estimate=cost,
    )(*inputs)
    return out_row.reshape(B, 1)


def reference_forward(x, query, key, value, params):
    """Pure-JAX reference mirroring the PyTorch module (explicit concat+linear)."""
    x_enc = jax.nn.relu(x @ params["w_enc"] + params["b_enc"])
    scores = jnp.einsum('bsq,qk,btk->bst', query, params["w_att"], key)
    scores = scores / math.sqrt(key.shape[-1])
    attn = jax.nn.softmax(scores, axis=-1)
    pooled = jnp.mean(jnp.einsum('bst,btv->bsv', attn, value), axis=1)
    features = jnp.concatenate([x_enc, pooled], axis=-1)
    w_reg = jnp.concatenate([params["w_reg_x"], params["w_reg_c"]], axis=0)
    return features @ w_reg + params["b_reg"]


if __name__ == "__main__":
    # Small shapes consistent with the module's forward signature.
    B, D_in, H = 2, 32, 32
    Sq, Sk = 8, 8
    query_dim, key_dim, value_dim = 32, 32, 32

    root = jax.random.PRNGKey(0)
    ks = jax.random.split(root, 10)

    # Deterministic synthetic parameters (shapes implied by __init__ dims).
    params = {
        "w_enc":   jax.random.normal(ks[0], (D_in, H), jnp.float32) * 0.1,
        "b_enc":   jax.random.normal(ks[1], (1, H), jnp.float32) * 0.1,
        "w_att":   jax.random.normal(ks[2], (query_dim, key_dim), jnp.float32) * 0.1,
        "w_reg_x": jax.random.normal(ks[3], (H, 1), jnp.float32) * 0.1,
        "w_reg_c": jax.random.normal(ks[4], (value_dim, 1), jnp.float32) * 0.1,
        "b_reg":   jax.random.normal(ks[5], (1, 1), jnp.float32) * 0.1,
    }

    x = jax.random.normal(ks[6], (B, D_in), jnp.float32)
    query = jax.random.normal(ks[7], (B, Sq, query_dim), jnp.float32)
    key = jax.random.normal(ks[8], (B, Sk, key_dim), jnp.float32)
    value = jax.random.normal(ks[9], (B, Sk, value_dim), jnp.float32)

    # One-time parameter prep (scale/mean folds + single-slab packing).
    kparams = prepare_params(params, key_dim=key_dim, n_queries=Sq)

    out = combined_model_forward(x, query, key, value, kparams)
    jax.block_until_ready(out)

    ref = reference_forward(x, query, key, value, params)
    assert out.shape == (B, 1)
    # approx=True (EUP vrcp) softmax reciprocal -> slightly relaxed tolerance
    assert jnp.allclose(out, ref, atol=2e-3, rtol=2e-3), (out, ref)

    print("KERNEL_OK")
</pallas_src>

<mosaic_0001>
module attributes {stable_mosaic.version = 11 : i64} {
  func.func @kernel(%arg0: memref<2x32xf32, #tpu.memory_space<vmem>>, %arg1: memref<16x32xf32, #tpu.memory_space<vmem>>, %arg2: memref<2x8x32xf32, #tpu.memory_space<vmem>>, %arg3: memref<2x8x32xf32, #tpu.memory_space<vmem>>, %arg4: memref<96x32xf32, #tpu.memory_space<vmem>>, %arg5: memref<1x2xf32, #tpu.memory_space<vmem>>) attributes {dimension_semantics = [], scalar_prefetch = 0 : i64, scratch_operands = 0 : i64, tpu.core_type = #tpu.core_type<tc>} {
    %c0 = arith.constant 0 : index
    %c0_0 = arith.constant 0 : index
    %0 = vector.load %arg4[%c0, %c0_0] : memref<96x32xf32, #tpu.memory_space<vmem>>, vector<32x32xf32>
    %c32 = arith.constant 32 : index
    %c0_1 = arith.constant 0 : index
    %1 = vector.load %arg4[%c32, %c0_1] : memref<96x32xf32, #tpu.memory_space<vmem>>, vector<1x32xf32>
    %c40 = arith.constant 40 : index
    %c0_2 = arith.constant 0 : index
    %2 = vector.load %arg4[%c40, %c0_2] : memref<96x32xf32, #tpu.memory_space<vmem>>, vector<32x32xf32>
    %c72 = arith.constant 72 : index
    %c0_3 = arith.constant 0 : index
    %3 = vector.load %arg4[%c72, %c0_3] : memref<96x32xf32, #tpu.memory_space<vmem>>, vector<1x32xf32>
    %c80 = arith.constant 80 : index
    %c0_4 = arith.constant 0 : index
    %4 = vector.load %arg4[%c80, %c0_4] : memref<96x32xf32, #tpu.memory_space<vmem>>, vector<1x32xf32>
    %c88 = arith.constant 88 : index
    %c0_5 = arith.constant 0 : index
    %5 = vector.load %arg4[%c88, %c0_5] : memref<96x32xf32, #tpu.memory_space<vmem>>, vector<1x1xf32>
    %c0_6 = arith.constant 0 : index
    %c0_7 = arith.constant 0 : index
    %6 = vector.load %arg0[%c0_6, %c0_7] : memref<2x32xf32, #tpu.memory_space<vmem>>, vector<2x32xf32>
    %cst = arith.constant dense<0.000000e+00> : vector<2x32xf32>
    %7 = tpu.matmul %6, %0, %cst {dimension_numbers = #tpu.dot_dimension_numbers<[1], [0], [0], [1], [0, 0, 1, 1], [], []>} : vector<2x32xf32>, vector<32x32xf32>, vector<2x32xf32> -> vector<2x32xf32>
    %8 = vector.broadcast %1 : vector<1x32xf32> to vector<2x32xf32>
    %9 = arith.addf %7, %8 : vector<2x32xf32>
    %cst_8 = arith.constant 0.000000e+00 : f32
    %10 = vector.broadcast %cst_8 : f32 to vector<2x32xf32>
    %11 = arith.maximumf %9, %10 : vector<2x32xf32>
    %c0_9 = arith.constant 0 : index
    %c0_10 = arith.constant 0 : index
    %12 = vector.load %arg1[%c0_9, %c0_10] : memref<16x32xf32, #tpu.memory_space<vmem>>, vector<16x32xf32>
    %cst_11 = arith.constant dense<0.000000e+00> : vector<16x32xf32>
    %13 = tpu.matmul %12, %2, %cst_11 {dimension_numbers = #tpu.dot_dimension_numbers<[1], [0], [0], [1], [0, 0, 1, 1], [], []>} : vector<16x32xf32>, vector<32x32xf32>, vector<16x32xf32> -> vector<16x32xf32>
    %14 = vector.extract_strided_slice %13 {offsets = [0, 0], sizes = [8, 32], strides = [1, 1]} : vector<16x32xf32> to vector<8x32xf32>
    %c0_12 = arith.constant 0 : index
    %c0_13 = arith.constant 0 : index
    %c0_14 = arith.constant 0 : index
    %15 = vector.load %arg2[%c0_12, %c0_13, %c0_14] : memref<2x8x32xf32, #tpu.memory_space<vmem>>, vector<1x8x32xf32>
    %16 = vector.shape_cast %15 : vector<1x8x32xf32> to vector<8x32xf32>
    %cst_15 = arith.constant dense<0.000000e+00> : vector<8x8xf32>
    %17 = tpu.matmul %14, %16, %cst_15 {dimension_numbers = #tpu.dot_dimension_numbers<[1], [1], [0], [0], [0, 0, 1, 0], [], []>} : vector<8x32xf32>, vector<8x32xf32>, vector<8x8xf32> -> vector<8x8xf32>
    %cst_16 = arith.constant dense<0xFF800000> : vector<8xf32>
    %18 = vector.multi_reduction <maximumf>, %17, %cst_16 [1] : vector<8x8xf32> to vector<8xf32>
    %19 = vector.shape_cast %18 : vector<8xf32> to vector<8x1xf32>
    %20 = vector.broadcast %19 : vector<8x1xf32> to vector<8x8xf32>
    %21 = arith.subf %17, %20 : vector<8x8xf32>
    %22 = math.exp %21 : vector<8x8xf32>
    %cst_17 = arith.constant dense<0.000000e+00> : vector<8xf32>
    %23 = vector.multi_reduction <add>, %22, %cst_17 [1] : vector<8x8xf32> to vector<8xf32>
    %24 = vector.shape_cast %23 : vector<8xf32> to vector<8x1xf32>
    %25 = tpu.reciprocal %24 {approx = true} : vector<8x1xf32> -> vector<8x1xf32>
    %26 = vector.broadcast %25 : vector<8x1xf32> to vector<8x8xf32>
    %27 = arith.mulf %22, %26 : vector<8x8xf32>
    %c0_18 = arith.constant 0 : index
    %c0_19 = arith.constant 0 : index
    %c0_20 = arith.constant 0 : index
    %28 = vector.load %arg3[%c0_18, %c0_19, %c0_20] : memref<2x8x32xf32, #tpu.memory_space<vmem>>, vector<1x8x32xf32>
    %29 = vector.shape_cast %28 : vector<1x8x32xf32> to vector<8x32xf32>
    %cst_21 = arith.constant dense<0.000000e+00> : vector<8x32xf32>
    %30 = tpu.matmul %27, %29, %cst_21 {dimension_numbers = #tpu.dot_dimension_numbers<[1], [0], [0], [1], [0, 0, 1, 1], [], []>} : vector<8x8xf32>, vector<8x32xf32>, vector<8x32xf32> -> vector<8x32xf32>
    %31 = vector.broadcast %4 : vector<1x32xf32> to vector<8x32xf32>
    %32 = arith.mulf %30, %31 : vector<8x32xf32>
    %33 = vector.shape_cast %32 : vector<8x32xf32> to vector<1x8x32xf32>
    %cst_22 = arith.constant dense<0.000000e+00> : vector<1xf32>
    %34 = vector.multi_reduction <add>, %33, %cst_22 [1, 2] : vector<1x8x32xf32> to vector<1xf32>
    %35 = vector.shape_cast %34 : vector<1xf32> to vector<1x1x1xf32>
    %36 = vector.extract %35[0, 0, 0] : f32 from vector<1x1x1xf32>
    %37 = vector.broadcast %36 : f32 to vector<1x1xf32>
    %38 = vector.extract_strided_slice %11 {offsets = [0, 0], sizes = [1, 32], strides = [1, 1]} : vector<2x32xf32> to vector<1x32xf32>
    %39 = arith.mulf %38, %3 : vector<1x32xf32>
    %cst_23 = arith.constant dense<0.000000e+00> : vector<1xf32>
    %40 = vector.multi_reduction <add>, %39, %cst_23 [1] : vector<1x32xf32> to vector<1xf32>
    %41 = vector.shape_cast %40 : vector<1xf32> to vector<1x1xf32>
    %42 = arith.addf %41, %37 : vector<1x1xf32>
    %43 = arith.addf %42, %5 : vector<1x1xf32>
    %44 = vector.extract_strided_slice %13 {offsets = [8, 0], sizes = [8, 32], strides = [1, 1]} : vector<16x32xf32> to vector<8x32xf32>
    %c1 = arith.constant 1 : index
    %c0_24 = arith.constant 0 : index
    %c0_25 = arith.constant 0 : index
    %45 = vector.load %arg2[%c1, %c0_24, %c0_25] : memref<2x8x32xf32, #tpu.memory_space<vmem>>, vector<1x8x32xf32>
    %46 = vector.shape_cast %45 : vector<1x8x32xf32> to vector<8x32xf32>
    %cst_26 = arith.constant dense<0.000000e+00> : vector<8x8xf32>
    %47 = tpu.matmul %44, %46, %cst_26 {dimension_numbers = #tpu.dot_dimension_numbers<[1], [1], [0], [0], [0, 0, 1, 0], [], []>} : vector<8x32xf32>, vector<8x32xf32>, vector<8x8xf32> -> vector<8x8xf32>
    %cst_27 = arith.constant dense<0xFF800000> : vector<8xf32>
    %48 = vector.multi_reduction <maximumf>, %47, %cst_27 [1] : vector<8x8xf32> to vector<8xf32>
    %49 = vector.shape_cast %48 : vector<8xf32> to vector<8x1xf32>
    %50 = vector.broadcast %49 : vector<8x1xf32> to vector<8x8xf32>
    %51 = arith.subf %47, %50 : vector<8x8xf32>
    %52 = math.exp %51 : vector<8x8xf32>
    %cst_28 = arith.constant dense<0.000000e+00> : vector<8xf32>
    %53 = vector.multi_reduction <add>, %52, %cst_28 [1] : vector<8x8xf32> to vector<8xf32>
    %54 = vector.shape_cast %53 : vector<8xf32> to vector<8x1xf32>
    %55 = tpu.reciprocal %54 {approx = true} : vector<8x1xf32> -> vector<8x1xf32>
    %56 = vector.broadcast %55 : vector<8x1xf32> to vector<8x8xf32>
    %57 = arith.mulf %52, %56 : vector<8x8xf32>
    %c1_29 = arith.constant 1 : index
    %c0_30 = arith.constant 0 : index
    %c0_31 = arith.constant 0 : index
    %58 = vector.load %arg3[%c1_29, %c0_30, %c0_31] : memref<2x8x32xf32, #tpu.memory_space<vmem>>, vector<1x8x32xf32>
    %59 = vector.shape_cast %58 : vector<1x8x32xf32> to vector<8x32xf32>
    %cst_32 = arith.constant dense<0.000000e+00> : vector<8x32xf32>
    %60 = tpu.matmul %57, %59, %cst_32 {dimension_numbers = #tpu.dot_dimension_numbers<[1], [0], [0], [1], [0, 0, 1, 1], [], []>} : vector<8x8xf32>, vector<8x32xf32>, vector<8x32xf32> -> vector<8x32xf32>
    %61 = vector.broadcast %4 : vector<1x32xf32> to vector<8x32xf32>
    %62 = arith.mulf %60, %61 : vector<8x32xf32>
    %63 = vector.shape_cast %62 : vector<8x32xf32> to vector<1x8x32xf32>
    %cst_33 = arith.constant dense<0.000000e+00> : vector<1xf32>
    %64 = vector.multi_reduction <add>, %63, %cst_33 [1, 2] : vector<1x8x32xf32> to vector<1xf32>
    %65 = vector.shape_cast %64 : vector<1xf32> to vector<1x1x1xf32>
    %66 = vector.extract %65[0, 0, 0] : f32 from vector<1x1x1xf32>
    %67 = vector.broadcast %66 : f32 to vector<1x1xf32>
    %68 = vector.extract_strided_slice %11 {offsets = [1, 0], sizes = [1, 32], strides = [1, 1]} : vector<2x32xf32> to vector<1x32xf32>
    %69 = arith.mulf %68, %3 : vector<1x32xf32>
    %cst_34 = arith.constant dense<0.000000e+00> : vector<1xf32>
    %70 = vector.multi_reduction <add>, %69, %cst_34 [1] : vector<1x32xf32> to vector<1xf32>
    %71 = vector.shape_cast %70 : vector<1xf32> to vector<1x1xf32>
    %72 = arith.addf %71, %67 : vector<1x1xf32>
    %73 = arith.addf %72, %5 : vector<1x1xf32>
    %74 = tpu.concatenate %43, %73 in 1 : vector<1x1xf32>, vector<1x1xf32> -> vector<1x2xf32>
    %c0_35 = arith.constant 0 : index
    %c0_36 = arith.constant 0 : index
    %75 = vector.load %arg5[%c0_35, %c0_36] : memref<1x2xf32, #tpu.memory_space<vmem>>, vector<1x2xf32>
    tpu.vector_store %arg5[%c0_35, %c0_36], %74 {strides = array<i32>} : memref<1x2xf32, #tpu.memory_space<vmem>>, vector<1x2xf32>,
    return
  }
}

</mosaic_0001>

<bundles_post_ra>
// kernel: tpu_custom_call.1
= control target key start
LH: loop header
LB: loop body
LE: loop exit
PB: predicated region body
PF: predicated region fallthrough
CT: control target
= control target key end

     0   :  { %vm38_vm0 = vcmask 261120   ;;  %v706_v3 = vmov 0.0   ;;  %s833_s0 = inlined_call_operand.vmem [shape: f32[2,32], index: 0, kind: input, shape index: {}]   ;;  %s834_s1 = inlined_call_operand.vmem [shape: f32[16,32], index: 1, kind: input, shape index: {}]   ;;  %s835_s2 = inlined_call_operand.vmem [shape: f32[2,8,32], index: 2, kind: input, shape index: {}]   ;;  %s836_s3 = inlined_call_operand.vmem [shape: f32[2,8,32], index: 3, kind: input, shape index: {}]   ;;  %s837_s4 = inlined_call_operand.vmem [shape: f32[96,32], index: 4, kind: input, shape index: {}]   ;;  %s838_s5 = inlined_call_operand.hbm [shape: f32[1,2], index: 5, kind: output, shape index: {}]  }
   0x1   :  { %v29_v0 = vld [vmem:[%s837_s4 + $0x40] sm:$0xff]  ;;  %v28_v1 = vld [vmem:[%s837_s4 + $0x38] sm:$0xff]  ;;  %626 = vmatprep.subr.mxu0 %v706_v3  ;;  %v27_v4 = vld [vmem:[%s837_s4 + $0x30] sm:$0xff] }
   0x2   :  { %637 = vmatprep.subr.mxu1 %v29_v0  ;;  %v113_v2 = vld [vmem:[%s834_s1] sm:$0xff]  ;;  %v24_v5 = vld [vmem:[%s837_s4 + $0x18] sm:$0xff]  ;;  %v23_v6 = vld [vmem:[%s837_s4 + $0x10] sm:$0xff] }
   0x3   :  { %638 = vmatpush3.msra.mxu1 %v29_v0  ;;  %645 = vmatprep.mubr.msk.f32.mxu1 %vm38_vm0, %v113_v2  ;;  %v26_v7 = vld [vmem:[%s837_s4 + $0x28] sm:$0xff] }
   0x4   :  { %639 = vmatprep.subr.mxu1 %v28_v1  ;;  %627 = vmatpush3.msra.mxu0 %v24_v5  ;;  %v22_v8 = vld [vmem:[%s837_s4 + $0x8] sm:$0xff] }
   0x5   :  { %640 = vmatpush3.msra.mxu1 %v28_v1  ;;  %628 = vmatprep.subr.mxu0 %v706_v3 }
   0x6   :  { %10 = vsyncpa [#allocation3], 0  ;;  %641 = vmatprep.subr.mxu1 %v27_v4  ;;  %629 = vmatpush3.msra.mxu0 %v23_v6  ;;  %v114_v9 = vld [vmem:[%s834_s1 + $0x8] sm:$0xff]  ;;  %v21_v10 = vld [vmem:[%s837_s4] sm:$0xff]  ;;  %vm707_vm1 = vmmov 0   ;;  %vm273_vm2 = vcmask 64512  }
   0x7   :  { %642 = vmatpush3.msra.mxu1 %v27_v4  ;;  %630 = vmatprep.subr.mxu0 %v706_v3  ;;  %v33_v11 = vld [vmem:[%s833_s0] sm:$0x3]  ;;  %v602_v14 = vld [vmem:[%s835_s2 + $0x8] sm:$0xff]  ;;  %v601_v45 = vld [vmem:[%s837_s4 + $0x50] ss:$0 sm:$0xff]  ;;  %vm562_vm3 = vcmask 254977  }
   0x8   :  { %643 = vmatprep.subr.mxu1 %v26_v7  ;;  %631 = vmatpush3.msra.mxu0 %v22_v8  ;;  %v196_v12 = vld [vmem:[%s835_s2] sm:$0xff]  ;;  %v605_v39 = vld [vmem:[%s836_s3 + $0x8] sm:$0xff]  ;;  %vm376_vm4 = vcmask 253952   ;;  %s708_s29 = smov 1   ;;  %s709_s30 = smov [#allocation2]   ;;  %vm576_vm5 = vcmask 7168  }
   0x9   :  { %644 = vmatpush3.msra.mxu1 %v26_v7  ;;  %632 = vmatprep.subr.mxu0 %v706_v3  ;;  %v285_v34 = vld [vmem:[%s836_s3] sm:$0xff]  ;;  %v30_v44 = vld [vmem:[%s837_s4 + $0x48] sm:$0x1]  ;;  %s586_s6 = sshll.u32 %s709_s30, 4  ;;  %vm578_vm6 = vcmask 8192   ;;  %s587_s6 = int_to_ptr.vmem [resolvable:$true] %s586_s6 }
   0xa   :  { %646 = vmatmul.mubr.msk.f32.vlgmr.msra.gmra.mxu1 %vm38_vm0, %v114_v9  ;;  %633 = vmatpush3.msra.mxu0 %v21_v10  ;;  %v594_v42 = vld [vmem:[%s837_s4 + $0x20] ss:$0 sm:$0xff]  ;;  %v559_v47 = vrot.slane %v30_v44, 7  ;;  %v32_v10 = vld [vmem:[%s837_s4 + $0x58] sm:$0x1]  ;;  %s684_s4 = scalar_lea.vmem %s587_s6, 16  ;;  %p689_p1 = scmp.lt.s32.totalorder %s587_s6, %s587_s6 }
   0xb   :  { %634 = vmatprep.mubr.msk.f32.mxu0 %vm707_vm1, %v706_v3  ;;  %648 = vmatprep.subr.mxu0 %v706_v3  ;;  %p685_p0 = scmp.ne.s32.totalorder %s587_s6, %s684_s4  ;;  %s688_s7 = scalar_lea.vmem %s587_s6, 32 }
   0xc   :  { %635 = vmatmul.mubr.msk.f32.vlgmr.msra.gmra.mxu0 %vm38_vm0, %v33_v11  ;;  %653 = vmatprep.subr.mxu1 %v706_v3  ;;  %v568_v11 = vrot.slane %v32_v10, 7  ;;  %p690_p2 = scmp.lt.s32.totalorder %s688_s7, %s684_s4 }
   0xd   :  { %649 = vmatpush3.xpose.msk.msra.mxu0 %vm38_vm0, %v196_v12  ;;  %650 = vmatprep.mubr.msk.f32.mxu0 %vm707_vm1, %v706_v3 }
   0xe   :  { %658 = vmatprep.subr.mxu0 %v706_v3  ;;  %655 = vmatprep.mubr.msk.f32.mxu1 %vm707_vm1, %v706_v3  ;;  %p691_p3 = por %p690_p2, %p689_p1 }
   0xf   :  { %654 = vmatpush3.msra.mxu1 %v285_v34 }
  0x10   :  { %663 = vmatprep.subr.mxu1 %v706_v3  ;;  %p692_p4 = pnand %p691_p3, %p685_p0 }
  0xca   :  { %v647_v13 = vpop.f32.mrf.mxu1 }
  0xcc   :  { %v187_v15 = vpop.f32.mrf.mxu1  ;;  %v108_v16 = vpop.f32.mrf.mxu0 }
  0xcd   :  { %651 = vmatmul.mubr.msk.f32.vlgmr.msra.gmra.mxu0 %vm38_vm0, %v187_v15  ;;  %v109_v43 = vadd.f32 %v594_v42, %v108_v16 }
  0xce   :  { %659 = vmatpush3.xpose.msk.msra.mxu0 %vm38_vm0, %v602_v14  ;;  %660 = vmatprep.mubr.msk.f32.mxu0 %vm707_vm1, %v706_v3  ;;  %v636_v17 = vpop.f32.mrf.mxu0 }
  0xcf   :  { %v112_v46 = vmax.f32 %v109_v43, 0.0 }
  0xd1   :  { %661 = vmatmul.mubr.msk.f32.vlgmr.msra.gmra.mxu0 %vm38_vm0, %v647_v13  ;;  %v561_v52 = vmul.f32 %v559_v47, %v112_v46  ;;  %v375_v58 = vmul.f32 %v112_v46, %v30_v44 }
  0xd3   :  { %v563_v56 = vsel %vm562_vm3, %v561_v52, 0.0  ;;  %v377_v59 = vsel %vm376_vm4, %v375_v58, 0.0 }
 0x18d   :  { %v269_v18 = vpop.f32.mrf.mxu0 }
 0x18e   :  { %v274_v19 = vsel %vm273_vm2, %v269_v18, -inf }
 0x18f   :  { %275 = vmax.xlane.f32.xlu0 %v274_v19  ;;  %v652_v20 = vpop.f32.mrf.mxu0 }
 0x191   :  { %v456_v21 = vpop.f32.mrf.mxu0 }
 0x192   :  { %v460_v22 = vsel %vm273_vm2, %v456_v21, -inf }
 0x193   :  { %461 = vmax.xlane.f32.xlu0 %v460_v22  ;;  %v662_v23 = vpop.f32.mrf.mxu0 }
 0x218   :  { %v276_v24 = vpop.xlane.xlu0 %275 }
 0x219   :  { %v277_v25 = vsub.f32 %v269_v18, %v276_v24 }
 0x21b   :  { %v278_v26 = vmul.f32 1.442695, %v277_v25 }
 0x21c   :  { %v462_v27 = vpop.xlane.xlu0 %461 }
 0x21d   :  { %676 = vpow2.f32 %v278_v26  ;;  %v463_v28 = vsub.f32 %v456_v21, %v462_v27 }
 0x21f   :  { %v464_v29 = vmul.f32 1.442695, %v463_v28 }
 0x221   :  { %678 = vpow2.f32 %v464_v29 }
 0x22a   :  { %v677_v30 = vpop.eup %676 }
 0x22b   :  { %v280_v31 = vsel %vm273_vm2, %v677_v30, 0.0 }
 0x22c   :  { %281 = vadd.xlane.f32.xlu1 %v280_v31 }
 0x22e   :  { %v679_v32 = vpop.eup %678 }
 0x22f   :  { %v466_v33 = vsel %vm273_vm2, %v679_v32, 0.0 }
 0x230   :  { %467 = vadd.xlane.f32.xlu1 %v466_v33 }
 0x2b5   :  { %v282_v35 = vpop.xlane.xlu1 %281 }
 0x2b6   :  { %680 = vrcp.f32 %v282_v35 }
 0x2b9   :  { %v468_v36 = vpop.xlane.xlu1 %467 }
 0x2ba   :  { %682 = vrcp.f32 %v468_v36 }
 0x2c3   :  { %v681_v37 = vpop.eup %680 }
 0x2c4   :  { %v284_v38 = vmul.f32 %v681_v37, %v677_v30 }
 0x2c6   :  { %656 = vmatmul.mubr.msk.f32.vlgmr.msra.gmra.mxu1 %vm273_vm2, %v284_v38 }
 0x2c7   :  { %v683_v40 = vpop.eup %682  ;;  %664 = vmatpush3.msra.mxu1 %v605_v39  ;;  %665 = vmatprep.mubr.msk.f32.mxu1 %vm707_vm1, %v706_v3 }
 0x2c8   :  { %v470_v41 = vmul.f32 %v683_v40, %v679_v32 }
 0x2ca   :  { %666 = vmatmul.mubr.msk.f32.vlgmr.msra.gmra.mxu1 %vm273_vm2, %v470_v41 }
 0x386   :  { %v355_v48 = vpop.f32.mrf.mxu1 }
 0x387   :  { %v363_v49 = vmul.f32 %v601_v45, %v355_v48 }
 0x388   :  { %v657_v50 = vpop.f32.mrf.mxu1 }
 0x389   :  { %v364_v51 = vsel %vm38_vm0, %v363_v49, 0.0 }
 0x38a   :  { %365 = vadd.xlane.f32.xlu0 %v364_v51  ;;  %v542_v53 = vpop.f32.mrf.mxu1 }
 0x38b   :  { %v546_v54 = vmul.f32 %v601_v45, %v542_v53 }
 0x38c   :  { %v667_v55 = vpop.f32.mrf.mxu1 }
 0x38d   :  { %v547_v57 = vsel %vm38_vm0, %v546_v54, 0.0 }
 0x38e   :  { %564 = vadd.xlane.f32.xlu0 %v563_v56  ;;  %548 = vadd.xlane.f32.xlu1 %v547_v57 }
 0x392   :  { %378 = vadd.xlane.f32.xlu1 %v377_v59 }
 0x413   :  { %v366_v60 = vpop.xlane.xlu0 %365 }
 0x414   :  { %v367_v61 = vrot.slane %v366_v60, 4 }
 0x416   :  { %v368_v62 = vadd.f32 %v367_v61, %v366_v60 }
 0x417   :  { %v549_v63 = vpop.xlane.xlu1 %548  ;;  %v565_v12 = vpop.xlane.xlu0 %564 }
 0x418   :  { %v369_v0 = vrot.slane %v368_v62, 2  ;;  %v550_v1 = vrot.slane %v549_v63, 4 }
 0x41a   :  { %v551_v2 = vadd.f32 %v550_v1, %v549_v63  ;;  %v370_v3 = vadd.f32 %v369_v0, %v368_v62 }
 0x41b   :  { %v379_v18 = vpop.xlane.xlu1 %378 }
 0x41c   :  { %v552_v4 = vrot.slane %v551_v2, 2  ;;  %v371_v5 = vrot.slane %v370_v3, 1 }
 0x41e   :  { %v372_v6 = vadd.f32 %v371_v5, %v370_v3  ;;  %v553_v7 = vadd.f32 %v552_v4, %v551_v2 }
 0x420   :  { %668 = vpush %v372_v6  ;;  %v554_v8 = vrot.slane %v553_v7, 1 }
 0x422   :  { %v555_v9 = vadd.f32 %v554_v8, %v553_v7 }
 0x424   :  { %670 = vpush %v555_v9 }
 0x451   :  { %s669_s27 = spop %668 }
 0x452   :  { %v374_v17 = vstv %s669_s27 }
 0x453   :  { %v380_v19 = vadd.f32 %v379_v18, %v374_v17 }
 0x455   :  { %s671_s28 = spop %670  ;;  %v381_v20 = vadd.f32 %v380_v19, %v32_v10 }
 0x456   :  { %v557_v13 = vstv %s671_s28 }
 0x457   :  { %v566_v14 = vadd.f32 %v565_v12, %v557_v13 }
 0x459   :  { %v570_v15 = vadd.f32 %v568_v11, %v566_v14 }
 0x45b   :  { %v572_v16 = vrot.slane %v570_v15, 1 }
 0x45d   :  { %573 = vrot.lane.b32.xlu0 %v572_v16, %s708_s29 }
 0x4cf   :  { %v574_v21 = vpop.permute.xlu0 %573 }
 0x4d0   :  { %v577_v22 = vsel %vm576_vm5, %v381_v20, %v574_v21 }
 0x4d1   :  { %579 = vst.msk [vmem:[#allocation2] sm:$0x1] %vm578_vm6, %v577_v22 }
 0x4d2   :  { %695 = shalt.err (!%p692_p4)
}
 0x4d3   :  { %589 = dma.vmem_to_hbm [thread:$0]  %s587_s6, 16, %s838_s5, [#allocation3]  }
 0x4d4   :  { %704 = dma.done.wait [#allocation3], 16  }
 0x4d5   :  { %705 = vsyncadd [#allocation3], 4294967280 }
 0x4d6   :  { %593 = vsyncpa [#allocation3], 1 }

</bundles_post_ra>
